<compile_context>
chip_gen: v7x
topology: tpu7x:2x2x1
jax: 0.10.0
libtpu: 0.0.40
codegen_flags: <defaults>
</compile_context>

<pallas_src>
import functools
import math

import jax
import jax.numpy as jnp
from jax.experimental import pallas as pl
from jax.experimental.pallas import tpu as pltpu


# ----------------------------- Pallas kernel --------------------------------

def _bilstm_avg_kernel(x_ref, len_ref, wx_ref, wh_ref, b_ref, out_ref, gx_ref):
    """Whole bi-LSTM + masked avg-pool for one batch tile; time loop in-kernel.

    x_ref  : (T*bt, 2E)  [x_fwd(t) | x_bwd(t)] rows, t-major within the tile
    len_ref: (bt, 1)     int32 sequence lengths
    wx_ref : (2E, 8H)    fused block-diagonal input weights (gate-grouped cols)
    wh_ref : (2H, 8H)    fused block-diagonal recurrent weights
    b_ref  : (1, 8H)     fused bias
    out_ref: (bt, 2H)    pooled average, [fwd | bwd]
    gx_ref : (T*bt, 8H)  f32 VMEM scratch for the hoisted input projection
    """
    TB = x_ref.shape[0]
    bt, H2 = out_ref.shape          # H2 = 2 * per-direction hidden
    T = TB // bt
    H = H2 // 2

    # --- Hoisted input projection: one big lane-dense MXU matmul, bias folded.
    gx_ref[...] = (jnp.dot(x_ref[...], wx_ref[...],
                           preferred_element_type=jnp.float32) + b_ref[...])

    lens = len_ref[...]                                  # (bt, 1) int32, loaded once
    Wh = wh_ref[...]                                     # (2H, 8H) f32, loaded once

    # Lane selector: lanes [0, H) forward direction, [H, 2H) backward.
    lane = jax.lax.broadcasted_iota(jnp.int32, (1, H2), 1)
    is_bwd = lane >= H

    def step(t, carry):
        h, c, acc = carry                                # each (bt, 2H) f32
        row = pl.multiple_of(t * bt, bt)                 # bt is a multiple of 8
        gates = gx_ref[pl.ds(row, bt), :] + jnp.dot(
            h, Wh, preferred_element_type=jnp.float32)   # (bt, 8H)
        # Two full-128-lane transcendental passes; gate blocks are 2H-lane slices.
        sig = jax.nn.sigmoid(gates)
        tg = jnp.tanh(gates)
        i_g = sig[:, 0 * H2:1 * H2]
        f_g = sig[:, 1 * H2:2 * H2]
        g_g = tg[:, 2 * H2:3 * H2]
        o_g = sig[:, 3 * H2:4 * H2]
        c_new = f_g * c + i_g * g_g
        h_new = o_g * jnp.tanh(c_new)
        # pack_padded_sequence semantics: freeze state / zero output once the
        # (direction-dependent) effective timestep passes the sequence length.
        t_eff = jnp.where(is_bwd, T - 1 - t, t)          # (1, 2H) int32
        valid = t_eff < lens                             # (bt, 2H) bool
        c = jnp.where(valid, c_new, c)
        h = jnp.where(valid, h_new, h)
        acc = acc + jnp.where(valid, h_new, 0.0)
        return h, c, acc

    zeros = jnp.zeros((bt, H2), jnp.float32)
    _, _, acc = jax.lax.fori_loop(0, T, step, (zeros, zeros, zeros),
                                  unroll=True if T <= 16 else 4)

    # Masked average pool; approx reciprocal rides the otherwise-idle EUP slot.
    lens_f = jnp.maximum(lens.astype(jnp.float32), 1.0)  # /0 guard (padded rows)
    out_ref[...] = (acc * pl.reciprocal(lens_f, approx=True)).astype(out_ref.dtype)


# ----------------------------- tiling heuristics ------------------------------

def _choose_bt(B_pad, T, x_elem_bytes, budget_bytes):
    """Largest multiple-of-8 batch tile under the VMEM budget (nb==2 preferred)."""
    def tile_bytes(bt):
        x_slab = 2 * T * bt * 128 * x_elem_bytes      # double-buffered, lane-padded
        gates = T * bt * 128 * 4                      # f32 gates scratch
        carry = 4 * bt * 128 * 4                      # h/c/acc + headroom
        return x_slab + gates + carry
    # v7x megacore: two parallel tiles keep M per matmul maximal.
    if B_pad >= 16 and B_pad % 16 == 0 and tile_bytes(B_pad // 2) <= budget_bytes:
        return B_pad // 2
    for d in range(B_pad, 7, -8):
        if B_pad % d == 0 and tile_bytes(d) <= budget_bytes:
            return d
    return 8


def bilstm_avg_pool_pallas(embeds_tbE, lengths, wx, wh, b_fused, *,
                           compute_dtype=jnp.float32,
                           vmem_budget_bytes=40 * 1024 * 1024):
    """embeds_tbE: (T, B, E) f32; lengths: (B,) int. Returns (B, 2H) f32."""
    T, B, E = embeds_tbE.shape
    H8 = wx.shape[-1]               # 8H
    H2 = H8 // 4                    # 2H

    # Pad batch to a multiple of 8 so every tile / per-step row slice is
    # sublane-aligned (padded rows: zero embeddings, length 0 -> output 0).
    lengths = lengths.astype(jnp.int32)
    B_pad = -(-B // 8) * 8
    if B_pad != B:
        embeds_tbE = jnp.pad(embeds_tbE, ((0, 0), (0, B_pad - B), (0, 0)))
        lengths = jnp.pad(lengths, (0, B_pad - B))

    bt = _choose_bt(B_pad, T, jnp.dtype(compute_dtype).itemsize, vmem_budget_bytes)
    nb = B_pad // bt

    # Lane-dense input slab: [x_fwd(t) | x_bwd(t)=x(T-1-t)] -> 2E lanes, regrouped
    # t-major inside each batch tile so the kernel sees one contiguous (T*bt, 2E)
    # slab per grid step (MXU matmul with M = T*bt).
    x_slab = jnp.concatenate([embeds_tbE, embeds_tbE[::-1]], axis=-1)     # (T, B_pad, 2E)
    x_slab = x_slab.reshape(T, nb, bt, 2 * E).transpose(1, 0, 2, 3)
    x_slab = x_slab.reshape(nb * T * bt, 2 * E).astype(compute_dtype)

    lens2d = lengths.reshape(B_pad, 1)
    wx_c = wx.astype(compute_dtype)

    grid_spec = pltpu.PrefetchScalarGridSpec(
        num_scalar_prefetch=0,
        grid=(nb,),
        in_specs=[
            pl.BlockSpec((T * bt, 2 * E), lambda i: (i, 0)),   # per-tile time slab
            pl.BlockSpec((bt, 1), lambda i: (i, 0)),           # lengths
            pl.BlockSpec(wx_c.shape, lambda i: (0, 0)),        # fused W_ih
            pl.BlockSpec(wh.shape, lambda i: (0, 0)),          # fused W_hh
            pl.BlockSpec(b_fused.shape, lambda i: (0, 0)),     # fused bias
        ],
        out_specs=pl.BlockSpec((bt, H2), lambda i: (i, 0)),
        scratch_shapes=[pltpu.VMEM((T * bt, H8), jnp.float32)],
    )

    out = pl.pallas_call(
        _bilstm_avg_kernel,
        out_shape=jax.ShapeDtypeStruct((B_pad, H2), jnp.float32),
        grid_spec=grid_spec,
        compiler_params=pltpu.CompilerParams(
            dimension_semantics=("parallel",),
            vmem_limit_bytes=48 * 1024 * 1024,   # > v5e's 16 MiB default, < v7x's 64 MiB
        ),
    )(x_slab, lens2d, wx_c, wh, b_fused)
    return out[:B]


# ---------------------- fused weight construction ----------------------------

def _fuse_bilstm_weights(raw, E, H):
    """Build block-diagonal Wx (2E,8H), Wh (2H,8H) and bias (1,8H).

    Input-row layout:   Wx rows = [ x_fwd (E) | x_bwd (E) ]
                        Wh rows = [ h_fwd (H) | h_bwd (H) ]
    Output col layout:  [ i_f i_b | f_f f_b | g_f g_b | o_f o_b ]  (each H lanes)
    """
    Wx = jnp.zeros((2 * E, 8 * H), jnp.float32)
    Wh = jnp.zeros((2 * H, 8 * H), jnp.float32)
    b = jnp.zeros((8 * H,), jnp.float32)
    for g in range(4):                       # PyTorch gate order: i, f, g, o
        rg = slice(g * H, (g + 1) * H)       # rows of this gate in W_ih / W_hh
        cf = slice(2 * g * H, 2 * g * H + H)            # fwd columns
        cb = slice(2 * g * H + H, 2 * (g + 1) * H)      # bwd columns
        Wx = Wx.at[0:E, cf].set(raw["W_ih_f"][rg].T)
        Wx = Wx.at[E:2 * E, cb].set(raw["W_ih_b"][rg].T)
        Wh = Wh.at[0:H, cf].set(raw["W_hh_f"][rg].T)
        Wh = Wh.at[H:2 * H, cb].set(raw["W_hh_b"][rg].T)
        b = b.at[cf].set(raw["b_f"][rg])
        b = b.at[cb].set(raw["b_b"][rg])
    return Wx, Wh, b.reshape(1, 8 * H)


# -------------------------- module-level wrapper -----------------------------

class LSTMFeatureExtractorPallas:
    """JAX/Pallas port of LSTMFeatureExtractor(num_layers=1, bdrnn=True, attn_type='avg')."""

    def __init__(self, vocab_size, emb_size, hidden_size, key,
                 compute_dtype=jnp.float32):
        assert hidden_size % 2 == 0
        H = hidden_size // 2            # per-direction hidden (bdrnn)
        E = emb_size
        self.hidden_size = H
        self.emb_size = E
        self.compute_dtype = compute_dtype
        k = 1.0 / math.sqrt(H)
        keys = jax.random.split(key, 9)
        u = lambda kk, shape: jax.random.uniform(kk, shape, jnp.float32, -k, k)

        self.embed_table = jax.random.normal(keys[0], (vocab_size, E), jnp.float32)
        # PyTorch LSTM parameterization: W_ih (4H,E), W_hh (4H,H), b = b_ih + b_hh.
        self.raw = {
            "W_ih_f": u(keys[1], (4 * H, E)),
            "W_hh_f": u(keys[2], (4 * H, H)),
            "b_f": u(keys[3], (4 * H,)) + u(keys[4], (4 * H,)),
            "W_ih_b": u(keys[5], (4 * H, E)),
            "W_hh_b": u(keys[6], (4 * H, H)),
            "b_b": u(keys[7], (4 * H,)) + u(keys[8], (4 * H,)),
        }
        self.wx, self.wh, self.b_fused = _fuse_bilstm_weights(self.raw, E, H)

    @functools.partial(jax.jit, static_argnums=0)
    def __call__(self, data, lengths, attention_mask=None):
        # data: (B, T) int token ids; lengths: (B,). attention_mask unused ('avg').
        # Gather directly into time-major (T, B, E): transpose the tiny id matrix,
        # not the activation tensor.
        embeds_tbE = self.embed_table[data.T.astype(jnp.int32)]     # (T, B, E)
        return bilstm_avg_pool_pallas(embeds_tbE, lengths, self.wx, self.wh,
                                      self.b_fused, compute_dtype=self.compute_dtype)


# ------------------------------ reference ------------------------------------

def _reference_avg(embeds_btE, lengths, raw):
    """Pure-JAX reference (masked bi-LSTM + avg pool) from the raw per-dir weights."""
    B, T, E = embeds_btE.shape
    H = raw["W_hh_f"].shape[-1]

    def cell(x_t, h, c, W_ih, W_hh, b):
        gates = x_t @ W_ih.T + h @ W_hh.T + b
        i = jax.nn.sigmoid(gates[:, :H])
        f = jax.nn.sigmoid(gates[:, H:2 * H])
        g = jnp.tanh(gates[:, 2 * H:3 * H])
        o = jax.nn.sigmoid(gates[:, 3 * H:])
        c_new = f * c + i * g
        return o * jnp.tanh(c_new), c_new

    def run_dir(W_ih, W_hh, b, reverse):
        ts = jnp.arange(T)
        if reverse:
            ts = ts[::-1]

        def scan_fn(carry, t):
            h, c = carry
            h_new, c_new = cell(embeds_btE[:, t], h, c, W_ih, W_hh, b)
            mask = (t < lengths)[:, None].astype(jnp.float32)
            h = mask * h_new + (1.0 - mask) * h
            c = mask * c_new + (1.0 - mask) * c
            return (h, c), h_new * mask

        init = (jnp.zeros((B, H), jnp.float32), jnp.zeros((B, H), jnp.float32))
        _, outs = jax.lax.scan(scan_fn, init, ts)
        return outs.sum(axis=0)

    sum_f = run_dir(raw["W_ih_f"], raw["W_hh_f"], raw["b_f"], False)
    sum_b = run_dir(raw["W_ih_b"], raw["W_hh_b"], raw["b_b"], True)
    pooled = jnp.concatenate([sum_f, sum_b], axis=-1)
    return pooled / lengths.astype(jnp.float32)[:, None]


# --------------------------------- main --------------------------------------

if __name__ == "__main__":
    VOCAB, EMB, HIDDEN = 50, 32, 32
    B, T = 2, 8

    key = jax.random.PRNGKey(0)
    k_model, k_data = jax.random.split(key)

    model = LSTMFeatureExtractorPallas(VOCAB, EMB, HIDDEN, k_model)

    data = jax.random.randint(k_data, (B, T), 0, VOCAB, dtype=jnp.int32)
    lengths = jnp.array([T, 5], dtype=jnp.int32)                 # sorted descending
    attention_mask = (jnp.arange(T)[None, :] < lengths[:, None]).astype(jnp.float32)

    out = jax.block_until_ready(model(data, lengths, attention_mask))
    assert out.shape == (B, HIDDEN), out.shape

    ref = _reference_avg(model.embed_table[data], lengths, model.raw)
    max_err = float(jnp.max(jnp.abs(out - ref)))
    assert max_err < 5e-3, f"f32 path mismatch vs reference: {max_err}"

    # bf16 matmul path (v6e/v7x MXU-friendly): bf16 slab/W_ih, f32 accumulation
    # and f32 gate/VPU/EUP math. Looser tolerance for the bf16 input cast.
    model_bf16 = LSTMFeatureExtractorPallas(VOCAB, EMB, HIDDEN, k_model,
                                            compute_dtype=jnp.bfloat16)
    out_bf16 = jax.block_until_ready(model_bf16(data, lengths, attention_mask))
    max_err_bf16 = float(jnp.max(jnp.abs(out_bf16 - ref)))
    assert max_err_bf16 < 5e-2, f"bf16 path mismatch vs reference: {max_err_bf16}"

    print("KERNEL_OK")
</pallas_src>

<mosaic_0001>
module attributes {stable_mosaic.version = 11 : i64} {
  func.func @_bilstm_avg_kernel(%arg0: i32, %arg1: memref<64x64xf32, #tpu.memory_space<vmem>>, %arg2: memref<8x1xi32, #tpu.memory_space<vmem>>, %arg3: memref<64x128xf32, #tpu.memory_space<vmem>>, %arg4: memref<32x128xf32, #tpu.memory_space<vmem>>, %arg5: memref<1x128xf32, #tpu.memory_space<vmem>>, %arg6: memref<8x32xf32, #tpu.memory_space<vmem>>, %arg7: memref<64x128xf32, #tpu.memory_space<vmem>>) attributes {dimension_semantics = [#tpu.dimension_semantics<parallel>], iteration_bounds = array<i64: 1>, scalar_prefetch = 0 : i64, scratch_operands = 1 : i64, tpu.core_type = #tpu.core_type<tc>, window_params = [{transform_indices = @transform_0, window_bounds = array<i64: 64, 64>}, {transform_indices = @transform_1, window_bounds = array<i64: 8, 1>}, {pipeline_mode = #tpu.pipeline_mode<synchronous>, transform_indices = @transform_2, window_bounds = array<i64: 64, 128>}, {pipeline_mode = #tpu.pipeline_mode<synchronous>, transform_indices = @transform_3, window_bounds = array<i64: 32, 128>}, {pipeline_mode = #tpu.pipeline_mode<synchronous>, transform_indices = @transform_4, window_bounds = array<i64: 1, 128>}, {transform_indices = @transform_5, window_bounds = array<i64: 8, 32>}]} {
    %c0 = arith.constant 0 : index
    %c0_0 = arith.constant 0 : index
    %0 = vector.load %arg1[%c0, %c0_0] : memref<64x64xf32, #tpu.memory_space<vmem>>, vector<64x64xf32>
    %c0_1 = arith.constant 0 : index
    %c0_2 = arith.constant 0 : index
    %1 = vector.load %arg3[%c0_1, %c0_2] : memref<64x128xf32, #tpu.memory_space<vmem>>, vector<64x128xf32>
    %cst = arith.constant dense<0.000000e+00> : vector<64x128xf32>
    %2 = tpu.matmul %0, %1, %cst {dimension_numbers = #tpu.dot_dimension_numbers<[1], [0], [0], [1], [0, 0, 1, 1], [], []>} : vector<64x64xf32>, vector<64x128xf32>, vector<64x128xf32> -> vector<64x128xf32>
    %c0_3 = arith.constant 0 : index
    %c0_4 = arith.constant 0 : index
    %3 = vector.load %arg5[%c0_3, %c0_4] : memref<1x128xf32, #tpu.memory_space<vmem>>, vector<1x128xf32>
    %4 = vector.broadcast %3 : vector<1x128xf32> to vector<64x128xf32>
    %5 = arith.addf %2, %4 : vector<64x128xf32>
    %c0_5 = arith.constant 0 : index
    %c0_6 = arith.constant 0 : index
    %6 = vector.load %arg7[%c0_5, %c0_6] : memref<64x128xf32, #tpu.memory_space<vmem>>, vector<64x128xf32>
    tpu.vector_store %arg7[%c0_5, %c0_6], %5 {strides = array<i32>} : memref<64x128xf32, #tpu.memory_space<vmem>>, vector<64x128xf32>,
    %c0_7 = arith.constant 0 : index
    %c0_8 = arith.constant 0 : index
    %7 = vector.load %arg2[%c0_7, %c0_8] : memref<8x1xi32, #tpu.memory_space<vmem>>, vector<8x1xi32>
    %c0_9 = arith.constant 0 : index
    %c0_10 = arith.constant 0 : index
    %8 = vector.load %arg4[%c0_9, %c0_10] : memref<32x128xf32, #tpu.memory_space<vmem>>, vector<32x128xf32>
    %9 = tpu.iota {dimensions = array<i32: 1>} : vector<1x32xi32>
    %c16_i32 = arith.constant 16 : i32
    %10 = vector.broadcast %c16_i32 : i32 to vector<1x32xi32>
    %11 = arith.cmpi sge, %9, %10 : vector<1x32xi32>
    %cst_11 = arith.constant 0.000000e+00 : f32
    %12 = vector.broadcast %cst_11 : f32 to vector<8x32xf32>
    %c0_i32 = arith.constant 0 : i32
    %c8_i32 = arith.constant 8 : i32
    %13 = arith.muli %c0_i32, %c8_i32 : i32
    %14 = tpu.assume_multiple %13, 8 : i32
    %15 = arith.index_cast %14 : i32 to index
    %c0_12 = arith.constant 0 : index
    %16 = vector.load %arg7[%15, %c0_12] : memref<64x128xf32, #tpu.memory_space<vmem>>, vector<8x128xf32>
    %cst_13 = arith.constant dense<0.000000e+00> : vector<8x128xf32>
    %17 = tpu.matmul %12, %8, %cst_13 {dimension_numbers = #tpu.dot_dimension_numbers<[1], [0], [0], [1], [0, 0, 1, 1], [], []>} : vector<8x32xf32>, vector<32x128xf32>, vector<8x128xf32> -> vector<8x128xf32>
    %18 = arith.addf %16, %17 : vector<8x128xf32>
    %19 = arith.negf %18 : vector<8x128xf32>
    %20 = math.exp %19 : vector<8x128xf32>
    %cst_14 = arith.constant 1.000000e+00 : f32
    %21 = vector.broadcast %cst_14 : f32 to vector<8x128xf32>
    %22 = arith.addf %21, %20 : vector<8x128xf32>
    %23 = arith.divf %21, %22 : vector<8x128xf32>
    %24 = math.tanh %18 : vector<8x128xf32>
    %25 = vector.extract_strided_slice %23 {offsets = [0, 0], sizes = [8, 32], strides = [1, 1]} : vector<8x128xf32> to vector<8x32xf32>
    %26 = vector.extract_strided_slice %23 {offsets = [0, 32], sizes = [8, 32], strides = [1, 1]} : vector<8x128xf32> to vector<8x32xf32>
    %27 = vector.extract_strided_slice %24 {offsets = [0, 64], sizes = [8, 32], strides = [1, 1]} : vector<8x128xf32> to vector<8x32xf32>
    %28 = vector.extract_strided_slice %23 {offsets = [0, 96], sizes = [8, 32], strides = [1, 1]} : vector<8x128xf32> to vector<8x32xf32>
    %29 = arith.mulf %26, %12 : vector<8x32xf32>
    %30 = arith.mulf %25, %27 : vector<8x32xf32>
    %31 = arith.addf %29, %30 : vector<8x32xf32>
    %32 = math.tanh %31 : vector<8x32xf32>
    %33 = arith.mulf %28, %32 : vector<8x32xf32>
    %c7_i32 = arith.constant 7 : i32
    %34 = arith.subi %c7_i32, %c0_i32 : i32
    %35 = vector.broadcast %34 : i32 to vector<1x32xi32>
    %36 = vector.broadcast %c0_i32 : i32 to vector<1x32xi32>
    %37 = arith.select %11, %35, %36 : vector<1x32xi1>, vector<1x32xi32>
    %38 = vector.broadcast %37 : vector<1x32xi32> to vector<8x32xi32>
    %39 = vector.broadcast %7 : vector<8x1xi32> to vector<8x32xi32>
    %40 = arith.cmpi slt, %38, %39 : vector<8x32xi32>
    %41 = arith.select %40, %31, %12 : vector<8x32xi1>, vector<8x32xf32>
    %42 = arith.select %40, %33, %12 : vector<8x32xi1>, vector<8x32xf32>
    %cst_15 = arith.constant 0.000000e+00 : f32
    %43 = vector.broadcast %cst_15 : f32 to vector<8x32xf32>
    %44 = arith.select %40, %33, %43 : vector<8x32xi1>, vector<8x32xf32>
    %45 = arith.addf %12, %44 : vector<8x32xf32>
    %c1_i32 = arith.constant 1 : i32
    %c8_i32_16 = arith.constant 8 : i32
    %46 = arith.muli %c1_i32, %c8_i32_16 : i32
    %47 = tpu.assume_multiple %46, 8 : i32
    %48 = arith.index_cast %47 : i32 to index
    %c0_17 = arith.constant 0 : index
    %49 = vector.load %arg7[%48, %c0_17] : memref<64x128xf32, #tpu.memory_space<vmem>>, vector<8x128xf32>
    %cst_18 = arith.constant dense<0.000000e+00> : vector<8x128xf32>
    %50 = tpu.matmul %42, %8, %cst_18 {dimension_numbers = #tpu.dot_dimension_numbers<[1], [0], [0], [1], [0, 0, 1, 1], [], []>} : vector<8x32xf32>, vector<32x128xf32>, vector<8x128xf32> -> vector<8x128xf32>
    %51 = arith.addf %49, %50 : vector<8x128xf32>
    %52 = arith.negf %51 : vector<8x128xf32>
    %53 = math.exp %52 : vector<8x128xf32>
    %cst_19 = arith.constant 1.000000e+00 : f32
    %54 = vector.broadcast %cst_19 : f32 to vector<8x128xf32>
    %55 = arith.addf %54, %53 : vector<8x128xf32>
    %56 = arith.divf %54, %55 : vector<8x128xf32>
    %57 = math.tanh %51 : vector<8x128xf32>
    %58 = vector.extract_strided_slice %56 {offsets = [0, 0], sizes = [8, 32], strides = [1, 1]} : vector<8x128xf32> to vector<8x32xf32>
    %59 = vector.extract_strided_slice %56 {offsets = [0, 32], sizes = [8, 32], strides = [1, 1]} : vector<8x128xf32> to vector<8x32xf32>
    %60 = vector.extract_strided_slice %57 {offsets = [0, 64], sizes = [8, 32], strides = [1, 1]} : vector<8x128xf32> to vector<8x32xf32>
    %61 = vector.extract_strided_slice %56 {offsets = [0, 96], sizes = [8, 32], strides = [1, 1]} : vector<8x128xf32> to vector<8x32xf32>
    %62 = arith.mulf %59, %41 : vector<8x32xf32>
    %63 = arith.mulf %58, %60 : vector<8x32xf32>
    %64 = arith.addf %62, %63 : vector<8x32xf32>
    %65 = math.tanh %64 : vector<8x32xf32>
    %66 = arith.mulf %61, %65 : vector<8x32xf32>
    %c7_i32_20 = arith.constant 7 : i32
    %67 = arith.subi %c7_i32_20, %c1_i32 : i32
    %68 = vector.broadcast %67 : i32 to vector<1x32xi32>
    %69 = vector.broadcast %c1_i32 : i32 to vector<1x32xi32>
    %70 = arith.select %11, %68, %69 : vector<1x32xi1>, vector<1x32xi32>
    %71 = vector.broadcast %70 : vector<1x32xi32> to vector<8x32xi32>
    %72 = vector.broadcast %7 : vector<8x1xi32> to vector<8x32xi32>
    %73 = arith.cmpi slt, %71, %72 : vector<8x32xi32>
    %74 = arith.select %73, %64, %41 : vector<8x32xi1>, vector<8x32xf32>
    %75 = arith.select %73, %66, %42 : vector<8x32xi1>, vector<8x32xf32>
    %cst_21 = arith.constant 0.000000e+00 : f32
    %76 = vector.broadcast %cst_21 : f32 to vector<8x32xf32>
    %77 = arith.select %73, %66, %76 : vector<8x32xi1>, vector<8x32xf32>
    %78 = arith.addf %45, %77 : vector<8x32xf32>
    %c2_i32 = arith.constant 2 : i32
    %c8_i32_22 = arith.constant 8 : i32
    %79 = arith.muli %c2_i32, %c8_i32_22 : i32
    %80 = tpu.assume_multiple %79, 8 : i32
    %81 = arith.index_cast %80 : i32 to index
    %c0_23 = arith.constant 0 : index
    %82 = vector.load %arg7[%81, %c0_23] : memref<64x128xf32, #tpu.memory_space<vmem>>, vector<8x128xf32>
    %cst_24 = arith.constant dense<0.000000e+00> : vector<8x128xf32>
    %83 = tpu.matmul %75, %8, %cst_24 {dimension_numbers = #tpu.dot_dimension_numbers<[1], [0], [0], [1], [0, 0, 1, 1], [], []>} : vector<8x32xf32>, vector<32x128xf32>, vector<8x128xf32> -> vector<8x128xf32>
    %84 = arith.addf %82, %83 : vector<8x128xf32>
    %85 = arith.negf %84 : vector<8x128xf32>
    %86 = math.exp %85 : vector<8x128xf32>
    %cst_25 = arith.constant 1.000000e+00 : f32
    %87 = vector.broadcast %cst_25 : f32 to vector<8x128xf32>
    %88 = arith.addf %87, %86 : vector<8x128xf32>
    %89 = arith.divf %87, %88 : vector<8x128xf32>
    %90 = math.tanh %84 : vector<8x128xf32>
    %91 = vector.extract_strided_slice %89 {offsets = [0, 0], sizes = [8, 32], strides = [1, 1]} : vector<8x128xf32> to vector<8x32xf32>
    %92 = vector.extract_strided_slice %89 {offsets = [0, 32], sizes = [8, 32], strides = [1, 1]} : vector<8x128xf32> to vector<8x32xf32>
    %93 = vector.extract_strided_slice %90 {offsets = [0, 64], sizes = [8, 32], strides = [1, 1]} : vector<8x128xf32> to vector<8x32xf32>
    %94 = vector.extract_strided_slice %89 {offsets = [0, 96], sizes = [8, 32], strides = [1, 1]} : vector<8x128xf32> to vector<8x32xf32>
    %95 = arith.mulf %92, %74 : vector<8x32xf32>
    %96 = arith.mulf %91, %93 : vector<8x32xf32>
    %97 = arith.addf %95, %96 : vector<8x32xf32>
    %98 = math.tanh %97 : vector<8x32xf32>
    %99 = arith.mulf %94, %98 : vector<8x32xf32>
    %c7_i32_26 = arith.constant 7 : i32
    %100 = arith.subi %c7_i32_26, %c2_i32 : i32
    %101 = vector.broadcast %100 : i32 to vector<1x32xi32>
    %102 = vector.broadcast %c2_i32 : i32 to vector<1x32xi32>
    %103 = arith.select %11, %101, %102 : vector<1x32xi1>, vector<1x32xi32>
    %104 = vector.broadcast %103 : vector<1x32xi32> to vector<8x32xi32>
    %105 = vector.broadcast %7 : vector<8x1xi32> to vector<8x32xi32>
    %106 = arith.cmpi slt, %104, %105 : vector<8x32xi32>
    %107 = arith.select %106, %97, %74 : vector<8x32xi1>, vector<8x32xf32>
    %108 = arith.select %106, %99, %75 : vector<8x32xi1>, vector<8x32xf32>
    %cst_27 = arith.constant 0.000000e+00 : f32
    %109 = vector.broadcast %cst_27 : f32 to vector<8x32xf32>
    %110 = arith.select %106, %99, %109 : vector<8x32xi1>, vector<8x32xf32>
    %111 = arith.addf %78, %110 : vector<8x32xf32>
    %c3_i32 = arith.constant 3 : i32
    %c8_i32_28 = arith.constant 8 : i32
    %112 = arith.muli %c3_i32, %c8_i32_28 : i32
    %113 = tpu.assume_multiple %112, 8 : i32
    %114 = arith.index_cast %113 : i32 to index
    %c0_29 = arith.constant 0 : index
    %115 = vector.load %arg7[%114, %c0_29] : memref<64x128xf32, #tpu.memory_space<vmem>>, vector<8x128xf32>
    %cst_30 = arith.constant dense<0.000000e+00> : vector<8x128xf32>
    %116 = tpu.matmul %108, %8, %cst_30 {dimension_numbers = #tpu.dot_dimension_numbers<[1], [0], [0], [1], [0, 0, 1, 1], [], []>} : vector<8x32xf32>, vector<32x128xf32>, vector<8x128xf32> -> vector<8x128xf32>
    %117 = arith.addf %115, %116 : vector<8x128xf32>
    %118 = arith.negf %117 : vector<8x128xf32>
    %119 = math.exp %118 : vector<8x128xf32>
    %cst_31 = arith.constant 1.000000e+00 : f32
    %120 = vector.broadcast %cst_31 : f32 to vector<8x128xf32>
    %121 = arith.addf %120, %119 : vector<8x128xf32>
    %122 = arith.divf %120, %121 : vector<8x128xf32>
    %123 = math.tanh %117 : vector<8x128xf32>
    %124 = vector.extract_strided_slice %122 {offsets = [0, 0], sizes = [8, 32], strides = [1, 1]} : vector<8x128xf32> to vector<8x32xf32>
    %125 = vector.extract_strided_slice %122 {offsets = [0, 32], sizes = [8, 32], strides = [1, 1]} : vector<8x128xf32> to vector<8x32xf32>
    %126 = vector.extract_strided_slice %123 {offsets = [0, 64], sizes = [8, 32], strides = [1, 1]} : vector<8x128xf32> to vector<8x32xf32>
    %127 = vector.extract_strided_slice %122 {offsets = [0, 96], sizes = [8, 32], strides = [1, 1]} : vector<8x128xf32> to vector<8x32xf32>
    %128 = arith.mulf %125, %107 : vector<8x32xf32>
    %129 = arith.mulf %124, %126 : vector<8x32xf32>
    %130 = arith.addf %128, %129 : vector<8x32xf32>
    %131 = math.tanh %130 : vector<8x32xf32>
    %132 = arith.mulf %127, %131 : vector<8x32xf32>
    %c7_i32_32 = arith.constant 7 : i32
    %133 = arith.subi %c7_i32_32, %c3_i32 : i32
    %134 = vector.broadcast %133 : i32 to vector<1x32xi32>
    %135 = vector.broadcast %c3_i32 : i32 to vector<1x32xi32>
    %136 = arith.select %11, %134, %135 : vector<1x32xi1>, vector<1x32xi32>
    %137 = vector.broadcast %136 : vector<1x32xi32> to vector<8x32xi32>
    %138 = vector.broadcast %7 : vector<8x1xi32> to vector<8x32xi32>
    %139 = arith.cmpi slt, %137, %138 : vector<8x32xi32>
    %140 = arith.select %139, %130, %107 : vector<8x32xi1>, vector<8x32xf32>
    %141 = arith.select %139, %132, %108 : vector<8x32xi1>, vector<8x32xf32>
    %cst_33 = arith.constant 0.000000e+00 : f32
    %142 = vector.broadcast %cst_33 : f32 to vector<8x32xf32>
    %143 = arith.select %139, %132, %142 : vector<8x32xi1>, vector<8x32xf32>
    %144 = arith.addf %111, %143 : vector<8x32xf32>
    %c4_i32 = arith.constant 4 : i32
    %c8_i32_34 = arith.constant 8 : i32
    %145 = arith.muli %c4_i32, %c8_i32_34 : i32
    %146 = tpu.assume_multiple %145, 8 : i32
    %147 = arith.index_cast %146 : i32 to index
    %c0_35 = arith.constant 0 : index
    %148 = vector.load %arg7[%147, %c0_35] : memref<64x128xf32, #tpu.memory_space<vmem>>, vector<8x128xf32>
    %cst_36 = arith.constant dense<0.000000e+00> : vector<8x128xf32>
    %149 = tpu.matmul %141, %8, %cst_36 {dimension_numbers = #tpu.dot_dimension_numbers<[1], [0], [0], [1], [0, 0, 1, 1], [], []>} : vector<8x32xf32>, vector<32x128xf32>, vector<8x128xf32> -> vector<8x128xf32>
    %150 = arith.addf %148, %149 : vector<8x128xf32>
    %151 = arith.negf %150 : vector<8x128xf32>
    %152 = math.exp %151 : vector<8x128xf32>
    %cst_37 = arith.constant 1.000000e+00 : f32
    %153 = vector.broadcast %cst_37 : f32 to vector<8x128xf32>
    %154 = arith.addf %153, %152 : vector<8x128xf32>
    %155 = arith.divf %153, %154 : vector<8x128xf32>
    %156 = math.tanh %150 : vector<8x128xf32>
    %157 = vector.extract_strided_slice %155 {offsets = [0, 0], sizes = [8, 32], strides = [1, 1]} : vector<8x128xf32> to vector<8x32xf32>
    %158 = vector.extract_strided_slice %155 {offsets = [0, 32], sizes = [8, 32], strides = [1, 1]} : vector<8x128xf32> to vector<8x32xf32>
    %159 = vector.extract_strided_slice %156 {offsets = [0, 64], sizes = [8, 32], strides = [1, 1]} : vector<8x128xf32> to vector<8x32xf32>
    %160 = vector.extract_strided_slice %155 {offsets = [0, 96], sizes = [8, 32], strides = [1, 1]} : vector<8x128xf32> to vector<8x32xf32>
    %161 = arith.mulf %158, %140 : vector<8x32xf32>
    %162 = arith.mulf %157, %159 : vector<8x32xf32>
    %163 = arith.addf %161, %162 : vector<8x32xf32>
    %164 = math.tanh %163 : vector<8x32xf32>
    %165 = arith.mulf %160, %164 : vector<8x32xf32>
    %c7_i32_38 = arith.constant 7 : i32
    %166 = arith.subi %c7_i32_38, %c4_i32 : i32
    %167 = vector.broadcast %166 : i32 to vector<1x32xi32>
    %168 = vector.broadcast %c4_i32 : i32 to vector<1x32xi32>
    %169 = arith.select %11, %167, %168 : vector<1x32xi1>, vector<1x32xi32>
    %170 = vector.broadcast %169 : vector<1x32xi32> to vector<8x32xi32>
    %171 = vector.broadcast %7 : vector<8x1xi32> to vector<8x32xi32>
    %172 = arith.cmpi slt, %170, %171 : vector<8x32xi32>
    %173 = arith.select %172, %163, %140 : vector<8x32xi1>, vector<8x32xf32>
    %174 = arith.select %172, %165, %141 : vector<8x32xi1>, vector<8x32xf32>
    %cst_39 = arith.constant 0.000000e+00 : f32
    %175 = vector.broadcast %cst_39 : f32 to vector<8x32xf32>
    %176 = arith.select %172, %165, %175 : vector<8x32xi1>, vector<8x32xf32>
    %177 = arith.addf %144, %176 : vector<8x32xf32>
    %c5_i32 = arith.constant 5 : i32
    %c8_i32_40 = arith.constant 8 : i32
    %178 = arith.muli %c5_i32, %c8_i32_40 : i32
    %179 = tpu.assume_multiple %178, 8 : i32
    %180 = arith.index_cast %179 : i32 to index
    %c0_41 = arith.constant 0 : index
    %181 = vector.load %arg7[%180, %c0_41] : memref<64x128xf32, #tpu.memory_space<vmem>>, vector<8x128xf32>
    %cst_42 = arith.constant dense<0.000000e+00> : vector<8x128xf32>
    %182 = tpu.matmul %174, %8, %cst_42 {dimension_numbers = #tpu.dot_dimension_numbers<[1], [0], [0], [1], [0, 0, 1, 1], [], []>} : vector<8x32xf32>, vector<32x128xf32>, vector<8x128xf32> -> vector<8x128xf32>
    %183 = arith.addf %181, %182 : vector<8x128xf32>
    %184 = arith.negf %183 : vector<8x128xf32>
    %185 = math.exp %184 : vector<8x128xf32>
    %cst_43 = arith.constant 1.000000e+00 : f32
    %186 = vector.broadcast %cst_43 : f32 to vector<8x128xf32>
    %187 = arith.addf %186, %185 : vector<8x128xf32>
    %188 = arith.divf %186, %187 : vector<8x128xf32>
    %189 = math.tanh %183 : vector<8x128xf32>
    %190 = vector.extract_strided_slice %188 {offsets = [0, 0], sizes = [8, 32], strides = [1, 1]} : vector<8x128xf32> to vector<8x32xf32>
    %191 = vector.extract_strided_slice %188 {offsets = [0, 32], sizes = [8, 32], strides = [1, 1]} : vector<8x128xf32> to vector<8x32xf32>
    %192 = vector.extract_strided_slice %189 {offsets = [0, 64], sizes = [8, 32], strides = [1, 1]} : vector<8x128xf32> to vector<8x32xf32>
    %193 = vector.extract_strided_slice %188 {offsets = [0, 96], sizes = [8, 32], strides = [1, 1]} : vector<8x128xf32> to vector<8x32xf32>
    %194 = arith.mulf %191, %173 : vector<8x32xf32>
    %195 = arith.mulf %190, %192 : vector<8x32xf32>
    %196 = arith.addf %194, %195 : vector<8x32xf32>
    %197 = math.tanh %196 : vector<8x32xf32>
    %198 = arith.mulf %193, %197 : vector<8x32xf32>
    %c7_i32_44 = arith.constant 7 : i32
    %199 = arith.subi %c7_i32_44, %c5_i32 : i32
    %200 = vector.broadcast %199 : i32 to vector<1x32xi32>
    %201 = vector.broadcast %c5_i32 : i32 to vector<1x32xi32>
    %202 = arith.select %11, %200, %201 : vector<1x32xi1>, vector<1x32xi32>
    %203 = vector.broadcast %202 : vector<1x32xi32> to vector<8x32xi32>
    %204 = vector.broadcast %7 : vector<8x1xi32> to vector<8x32xi32>
    %205 = arith.cmpi slt, %203, %204 : vector<8x32xi32>
    %206 = arith.select %205, %196, %173 : vector<8x32xi1>, vector<8x32xf32>
    %207 = arith.select %205, %198, %174 : vector<8x32xi1>, vector<8x32xf32>
    %cst_45 = arith.constant 0.000000e+00 : f32
    %208 = vector.broadcast %cst_45 : f32 to vector<8x32xf32>
    %209 = arith.select %205, %198, %208 : vector<8x32xi1>, vector<8x32xf32>
    %210 = arith.addf %177, %209 : vector<8x32xf32>
    %c6_i32 = arith.constant 6 : i32
    %c8_i32_46 = arith.constant 8 : i32
    %211 = arith.muli %c6_i32, %c8_i32_46 : i32
    %212 = tpu.assume_multiple %211, 8 : i32
    %213 = arith.index_cast %212 : i32 to index
    %c0_47 = arith.constant 0 : index
    %214 = vector.load %arg7[%213, %c0_47] : memref<64x128xf32, #tpu.memory_space<vmem>>, vector<8x128xf32>
    %cst_48 = arith.constant dense<0.000000e+00> : vector<8x128xf32>
    %215 = tpu.matmul %207, %8, %cst_48 {dimension_numbers = #tpu.dot_dimension_numbers<[1], [0], [0], [1], [0, 0, 1, 1], [], []>} : vector<8x32xf32>, vector<32x128xf32>, vector<8x128xf32> -> vector<8x128xf32>
    %216 = arith.addf %214, %215 : vector<8x128xf32>
    %217 = arith.negf %216 : vector<8x128xf32>
    %218 = math.exp %217 : vector<8x128xf32>
    %cst_49 = arith.constant 1.000000e+00 : f32
    %219 = vector.broadcast %cst_49 : f32 to vector<8x128xf32>
    %220 = arith.addf %219, %218 : vector<8x128xf32>
    %221 = arith.divf %219, %220 : vector<8x128xf32>
    %222 = math.tanh %216 : vector<8x128xf32>
    %223 = vector.extract_strided_slice %221 {offsets = [0, 0], sizes = [8, 32], strides = [1, 1]} : vector<8x128xf32> to vector<8x32xf32>
    %224 = vector.extract_strided_slice %221 {offsets = [0, 32], sizes = [8, 32], strides = [1, 1]} : vector<8x128xf32> to vector<8x32xf32>
    %225 = vector.extract_strided_slice %222 {offsets = [0, 64], sizes = [8, 32], strides = [1, 1]} : vector<8x128xf32> to vector<8x32xf32>
    %226 = vector.extract_strided_slice %221 {offsets = [0, 96], sizes = [8, 32], strides = [1, 1]} : vector<8x128xf32> to vector<8x32xf32>
    %227 = arith.mulf %224, %206 : vector<8x32xf32>
    %228 = arith.mulf %223, %225 : vector<8x32xf32>
    %229 = arith.addf %227, %228 : vector<8x32xf32>
    %230 = math.tanh %229 : vector<8x32xf32>
    %231 = arith.mulf %226, %230 : vector<8x32xf32>
    %c7_i32_50 = arith.constant 7 : i32
    %232 = arith.subi %c7_i32_50, %c6_i32 : i32
    %233 = vector.broadcast %232 : i32 to vector<1x32xi32>
    %234 = vector.broadcast %c6_i32 : i32 to vector<1x32xi32>
    %235 = arith.select %11, %233, %234 : vector<1x32xi1>, vector<1x32xi32>
    %236 = vector.broadcast %235 : vector<1x32xi32> to vector<8x32xi32>
    %237 = vector.broadcast %7 : vector<8x1xi32> to vector<8x32xi32>
    %238 = arith.cmpi slt, %236, %237 : vector<8x32xi32>
    %239 = arith.select %238, %229, %206 : vector<8x32xi1>, vector<8x32xf32>
    %240 = arith.select %238, %231, %207 : vector<8x32xi1>, vector<8x32xf32>
    %cst_51 = arith.constant 0.000000e+00 : f32
    %241 = vector.broadcast %cst_51 : f32 to vector<8x32xf32>
    %242 = arith.select %238, %231, %241 : vector<8x32xi1>, vector<8x32xf32>
    %243 = arith.addf %210, %242 : vector<8x32xf32>
    %c7_i32_52 = arith.constant 7 : i32
    %c8_i32_53 = arith.constant 8 : i32
    %244 = arith.muli %c7_i32_52, %c8_i32_53 : i32
    %245 = tpu.assume_multiple %244, 8 : i32
    %246 = arith.index_cast %245 : i32 to index
    %c0_54 = arith.constant 0 : index
    %247 = vector.load %arg7[%246, %c0_54] : memref<64x128xf32, #tpu.memory_space<vmem>>, vector<8x128xf32>
    %cst_55 = arith.constant dense<0.000000e+00> : vector<8x128xf32>
    %248 = tpu.matmul %240, %8, %cst_55 {dimension_numbers = #tpu.dot_dimension_numbers<[1], [0], [0], [1], [0, 0, 1, 1], [], []>} : vector<8x32xf32>, vector<32x128xf32>, vector<8x128xf32> -> vector<8x128xf32>
    %249 = arith.addf %247, %248 : vector<8x128xf32>
    %250 = arith.negf %249 : vector<8x128xf32>
    %251 = math.exp %250 : vector<8x128xf32>
    %cst_56 = arith.constant 1.000000e+00 : f32
    %252 = vector.broadcast %cst_56 : f32 to vector<8x128xf32>
    %253 = arith.addf %252, %251 : vector<8x128xf32>
    %254 = arith.divf %252, %253 : vector<8x128xf32>
    %255 = math.tanh %249 : vector<8x128xf32>
    %256 = vector.extract_strided_slice %254 {offsets = [0, 0], sizes = [8, 32], strides = [1, 1]} : vector<8x128xf32> to vector<8x32xf32>
    %257 = vector.extract_strided_slice %254 {offsets = [0, 32], sizes = [8, 32], strides = [1, 1]} : vector<8x128xf32> to vector<8x32xf32>
    %258 = vector.extract_strided_slice %255 {offsets = [0, 64], sizes = [8, 32], strides = [1, 1]} : vector<8x128xf32> to vector<8x32xf32>
    %259 = vector.extract_strided_slice %254 {offsets = [0, 96], sizes = [8, 32], strides = [1, 1]} : vector<8x128xf32> to vector<8x32xf32>
    %260 = arith.mulf %257, %239 : vector<8x32xf32>
    %261 = arith.mulf %256, %258 : vector<8x32xf32>
    %262 = arith.addf %260, %261 : vector<8x32xf32>
    %263 = math.tanh %262 : vector<8x32xf32>
    %264 = arith.mulf %259, %263 : vector<8x32xf32>
    %c7_i32_57 = arith.constant 7 : i32
    %265 = arith.subi %c7_i32_57, %c7_i32_52 : i32
    %266 = vector.broadcast %265 : i32 to vector<1x32xi32>
    %267 = vector.broadcast %c7_i32_52 : i32 to vector<1x32xi32>
    %268 = arith.select %11, %266, %267 : vector<1x32xi1>, vector<1x32xi32>
    %269 = vector.broadcast %268 : vector<1x32xi32> to vector<8x32xi32>
    %270 = vector.broadcast %7 : vector<8x1xi32> to vector<8x32xi32>
    %271 = arith.cmpi slt, %269, %270 : vector<8x32xi32>
    %272 = arith.select %271, %262, %239 : vector<8x32xi1>, vector<8x32xf32>
    %273 = arith.select %271, %264, %240 : vector<8x32xi1>, vector<8x32xf32>
    %cst_58 = arith.constant 0.000000e+00 : f32
    %274 = vector.broadcast %cst_58 : f32 to vector<8x32xf32>
    %275 = arith.select %271, %264, %274 : vector<8x32xi1>, vector<8x32xf32>
    %276 = arith.addf %243, %275 : vector<8x32xf32>
    %c8_i32_59 = arith.constant 8 : i32
    %277 = arith.sitofp %7 : vector<8x1xi32> to vector<8x1xf32>
    %cst_60 = arith.constant 1.000000e+00 : f32
    %278 = vector.broadcast %cst_60 : f32 to vector<8x1xf32>
    %279 = arith.maximumf %277, %278 : vector<8x1xf32>
    %280 = tpu.reciprocal %279 {approx = true} : vector<8x1xf32> -> vector<8x1xf32>
    %281 = vector.broadcast %280 : vector<8x1xf32> to vector<8x32xf32>
    %282 = arith.mulf %276, %281 : vector<8x32xf32>
    %c0_61 = arith.constant 0 : index
    %c0_62 = arith.constant 0 : index
    %283 = vector.load %arg6[%c0_61, %c0_62] : memref<8x32xf32, #tpu.memory_space<vmem>>, vector<8x32xf32>
    tpu.vector_store %arg6[%c0_61, %c0_62], %282 {strides = array<i32>} : memref<8x32xf32, #tpu.memory_space<vmem>>, vector<8x32xf32>,
    return
  }
  func.func @transform_0(%arg0: i32) -> (i32, i32) {
    %c0_i32 = arith.constant 0 : i32
    %c0_i32_0 = arith.constant 0 : i32
    return %arg0, %c0_i32 : i32, i32
  }
  func.func @transform_1(%arg0: i32) -> (i32, i32) {
    %c0_i32 = arith.constant 0 : i32
    %c0_i32_0 = arith.constant 0 : i32
    return %arg0, %c0_i32 : i32, i32
  }
  func.func @transform_2(%arg0: i32) -> (i32, i32) {
    %c0_i32 = arith.constant 0 : i32
    %c0_i32_0 = arith.constant 0 : i32
    %c0_i32_1 = arith.constant 0 : i32
    return %c0_i32, %c0_i32_0 : i32, i32
  }
  func.func @transform_3(%arg0: i32) -> (i32, i32) {
    %c0_i32 = arith.constant 0 : i32
    %c0_i32_0 = arith.constant 0 : i32
    %c0_i32_1 = arith.constant 0 : i32
    return %c0_i32, %c0_i32_0 : i32, i32
  }
  func.func @transform_4(%arg0: i32) -> (i32, i32) {
    %c0_i32 = arith.constant 0 : i32
    %c0_i32_0 = arith.constant 0 : i32
    %c0_i32_1 = arith.constant 0 : i32
    return %c0_i32, %c0_i32_0 : i32, i32
  }
  func.func @transform_5(%arg0: i32) -> (i32, i32) {
    %c0_i32 = arith.constant 0 : i32
    %c0_i32_0 = arith.constant 0 : i32
    return %arg0, %c0_i32 : i32, i32
  }
}

</mosaic_0001>

<bundles_post_ra>
// kernel: a_call__.1
= control target key start
LH: loop header
LB: loop body
LE: loop exit
PB: predicated region body
PF: predicated region fallthrough
CT: control target
= control target key end

     0   :  { %v1481_v3 = vmov 0.0|0.0   ;;  %vm1482_vm0 = vmmov 0   ;;  %v1483_v4 = vmov 0.0   ;;  %vm43_vm1 = vcmask 523264   ;;  %s1484_s21 = smov 64   ;;  %s1487_s24 = smov 96   ;;  %s1855_s2 = inlined_call_operand.vmem [shape: f32[64,128], index: 2, kind: input, shape index: {}]   ;;  %s1856_s3 = inlined_call_operand.vmem [shape: f32[32,128], index: 3, kind: input, shape index: {}]   ;;  %s1857_s0 = inlined_call_operand.vmem [shape: f32[64,64], index: 0, kind: input, shape index: {}]   ;;  %s1858_s4 = inlined_call_operand.vmem [shape: f32[1,128], index: 4, kind: input, shape index: {}]   ;;  %s1859_s1 = inlined_call_operand.vmem [shape: s32[8,1], index: 1, kind: input, shape index: {}]   ;;  %s1860_s5 = inlined_call_operand.vmem [shape: f32[8,32], index: 5, kind: output, shape index: {}]  }
   0x1   :  { %v28_v0 = vld [vmem:[%s1855_s2] sm:$0xff]  ;;  %v29_v1 = vld [vmem:[%s1855_s2 + $0x8] sm:$0xff]  ;;  %v30_v2 = vld [vmem:[%s1855_s2 + $0x10] sm:$0xff]  ;;  %1351 = vmatprep.subr.bf16.mxu1 %v1481_v3  ;;  %1255 = vmatprep.mubr.msk.f32.mxu1 %vm1482_vm0, %v1483_v4  ;;  %v1486_v36 = vmov 0   ;;  %v186_v44 = vlaneseq  ;;  %vm190_vm4 = vcmask 261120  }
   0x2   :  { %v1335_v5 = vpack.c.bf16 %v29_v1, %v28_v0  ;;  %v31_v6 = vld [vmem:[%s1855_s2 + $0x18] sm:$0xff]  ;;  %v32_v7 = vld [vmem:[%s1855_s2 + $0x20] sm:$0xff]  ;;  %v33_v9 = vld [vmem:[%s1855_s2 + $0x28] sm:$0xff]  ;;  %1413 = vset.pattern.permute.xlu1 %v1486_v36  ;;  %1414 = vset.pattern.permute.xlu0 %v1486_v36 }
   0x3   :  { %v1339_v8 = vpack.c.bf16 %v31_v6, %v30_v2  ;;  %v182_v10 = vld [vmem:[%s1856_s3] sm:$0xff]  ;;  %v183_v11 = vld [vmem:[%s1856_s3 + $0x8] sm:$0xff]  ;;  %v184_v14 = vld [vmem:[%s1856_s3 + $0x10] sm:$0xff]  ;;  %v1343_v16 = vpack.c.bf16 %v33_v9, %v32_v7  ;;  %v1609_v45 = vand.u32 127, %v186_v44  ;;  %v1489_v44 = vmov 2  }
   0x4   :  { %1336 = vmatprep.subr.bf16.mxu0 %v1335_v5  ;;  %v1552_v12 = vpack.c.bf16 %v183_v11, %v182_v10  ;;  %v20_v13 = vld [vmem:[%s1857_s0] sm:$0xff]  ;;  %v185_v15 = vld [vmem:[%s1856_s3 + $0x18] sm:$0xff]  ;;  %v34_v18 = vld [vmem:[%s1855_s2 + $0x30] sm:$0xff]  ;;  %v1488_v10 = vmov 1  }
   0x5   :  { %1338 = vmatpush3.bf16.msra.mxu0 %v1335_v5  ;;  %1235 = vmatprep.mubr.msk.f32.mxu0 %vm43_vm1, %v20_v13  ;;  %v1565_v17 = vpack.c.bf16 %v185_v15, %v184_v14  ;;  %v35_v19 = vld [vmem:[%s1855_s2 + $0x38] sm:$0xff]  ;;  %v21_v21 = vld [vmem:[%s1857_s0 + $0x8] sm:$0xff]  ;;  %v1595_v24 = vld [vmem:[%s1858_s4] ss:$0 sm:$0xff]  ;;  %s1485_s4 = smov 32   ;;  %vm188_vm2 = vcmp.ge.s32.totalorder %v1609_v45, 16 }
   0x6   :  { %1340 = vmatprep.subr.bf16.mxu0 %v1339_v8  ;;  %1353 = vmatpush3.bf16.msra.mxu1 %v1552_v12  ;;  %v1347_v20 = vpack.c.bf16 %v35_v19, %v34_v18  ;;  %v1604_v41 = vld [vmem:[%s1859_s1] sm:$0xff]  ;;  %v289_v46 = vsel %vm188_vm2, 7, %v1486_v36  ;;  %v22_v5 = vld [vmem:[%s1857_s0 + $0x10] sm:$0xff]  ;;  %v23_v6 = vld [vmem:[%s1857_s0 + $0x18] sm:$0xff]  ;;  %v1643_v11 = vsel %vm188_vm2, 6, %v1488_v10 }
   0x7   :  { %1354 = vmatprep.subr.bf16.mxu1 %v1481_v3  ;;  %v24_v36 = vld [vmem:[%s1857_s0 + $0x20] sm:$0xff] }
   0x9   :  { %1342 = vmatpush3.bf16.msra.mxu0 %v1339_v8 }
   0xa   :  { %1344 = vmatprep.subr.bf16.mxu0 %v1343_v16  ;;  %1356 = vmatpush3.bf16.msra.mxu1 %v1565_v17 }
   0xb   :  { %1357 = vmatprep.subr.bf16.mxu1 %v1481_v3 }
   0xd   :  { %1346 = vmatpush3.bf16.msra.mxu0 %v1343_v16  ;;  %1256 = vmatmul.mubr.f32.vlgmr.msra.gmra.mrb[0].mxu1 %v1483_v4 }
   0xe   :  { %1348 = vmatprep.subr.bf16.mxu0 %v1347_v20  ;;  %1359 = vmatpush3.bf16.msra.mxu1 %v1552_v12 }
   0xf   :  { %1360 = vmatprep.subr.bf16.mxu1 %v1481_v3  ;;  %1266 = vmatprep.mubr.msk.f32.mxu1 %vm1482_vm0, %v1483_v4 }
  0x11   :  { %1350 = vmatpush3.bf16.msra.mxu0 %v1347_v20 }
  0x12   :  { %1362 = vmatpush3.bf16.msra.mxu1 %v1565_v17  ;;  %1369 = vmatprep.subr.bf16.mxu0 %v1481_v3 }
  0x13   :  { %1363 = vmatprep.subr.bf16.mxu1 %v1481_v3 }
  0x14   :  { %1236 = vmatmul.mubr.msk.f32.vlgmr.msra.gmra.mrb[0].mxu0 %vm43_vm1, %v21_v21 }
  0x15   :  { %1371 = vmatpush3.bf16.msra.mxu0 %v1552_v12  ;;  %1238 = vmatprep.mubr.msk.f32.mxu0 %vm43_vm1, %v22_v5 }
  0x16   :  { %1372 = vmatprep.subr.bf16.mxu0 %v1481_v3 }
  0x18   :  { %1239 = vmatmul.mubr.msk.f32.gmra.mrb[2].mxu0 %vm43_vm1, %v23_v6 }
  0x19   :  { %1374 = vmatpush3.bf16.msra.mxu0 %v1565_v17  ;;  %1241 = vmatprep.mubr.msk.f32.mxu0 %vm43_vm1, %v24_v36 }
  0x1a   :  { %1381 = vmatprep.subr.bf16.mxu0 %v1481_v3 }
  0xe0   :  { %v260_v22 = vpop.f32.mrb[0].mxu1 }
  0xe1   :  { %v1257_v23 = vpop.f32.mrb[1].mxu1 }
  0xe7   :  { %v1237_v25 = vpop.f32.mrb[0].mxu0 }
  0xe8   :  { %v134_v26 = vpop.f32.mrb[1].mxu0  ;;  %v140_v52 = vadd.f32 %v1237_v25, %v1595_v24 }
  0xe9   :  { %v135_v27 = vadd.f32 %v1595_v24, %v134_v26 }
  0xeb   :  { %v264_v28 = vadd.f32 %v260_v22, %v135_v27  ;;  %v1652_v15 = vpop.f32.mrb[2].mxu0 }
  0xec   :  { %v144_v16 = vpop.f32.mrb[3].mxu0 }
  0xed   :  { %1415 = vtanh.f32 %v264_v28  ;;  %v1148_v30 = vmul.f32 -1.442695, %v264_v28  ;;  %v145_v20 = vadd.f32 %v1595_v24, %v144_v16 }
  0xef   :  { %1417 = vpow2.f32 %v1148_v30 }
  0xf7   :  { %v1416_v29 = vpop.eup %1415 }
  0xf8   :  { %274 = vrot.lane.b32.xlu0 %v1416_v29, %s1484_s21 }
  0xf9   :  { %v1418_v31 = vpop.eup %1417 }
  0xfa   :  { %v268_v32 = vadd.f32 1.0, %v1418_v31 }
  0xfc   :  { %1419 = vrcp.f32 %v268_v32 }
 0x106   :  { %v1420_v33 = vpop.eup %1419 }
 0x107   :  { %v272_v37 = vmul.f32 0.0, %v1420_v33 }
 0x16a   :  { %v275_v34 = vpop.permute.xlu0 %274 }
 0x16b   :  { %v277_v35 = vmul.f32 %v1420_v33, %v275_v34 }
 0x16d   :  { %279 = vrot.lane.b32.xlu0 %v277_v35, %s1485_s4 }
 0x1df   :  { %v280_v38 = vpop.permute.xlu0 %279 }
 0x1e0   :  { %v282_v39 = vadd.f32 %v280_v38, %v272_v37  ;;  %v25_v37 = vld [vmem:[%s1857_s0 + $0x28] sm:$0xff]  ;;  %v26_v38 = vld [vmem:[%s1857_s0 + $0x30] sm:$0xff] }
 0x1e1   :  { %1242 = vmatmul.mubr.msk.f32.gmra.mrb[4].mxu0 %vm43_vm1, %v25_v37 }
 0x1e2   :  { %1421 = vtanh.f32 %v282_v39  ;;  %1244 = vmatprep.mubr.msk.f32.mxu0 %vm43_vm1, %v26_v38 }
 0x1ec   :  { %v1422_v40 = vpop.eup %1421 }
 0x1ed   :  { %285 = vrot.lane.b32.xlu1 %v1422_v40, %s1484_s21 }
 0x1f1   :  { %291 = vperm.xlu1 %1413, %v1604_v41  }
 0x1f5   :  { %295 = vrot.lane.b32.xlu1 %v282_v39, %s1487_s24  ;;  %v27_v39 = vld [vmem:[%s1857_s0 + $0x38] sm:$0xff] }
 0x1f6   :  { %1245 = vmatmul.mubr.msk.f32.gmra.mrb[6].mxu0 %vm43_vm1, %v27_v39 }
 0x1f7   :  { %1288 = vmatprep.mubr.msk.f32.mxu0 %vm1482_vm0, %v1483_v4 }
 0x25f   :  { %v286_v42 = vpop.permute.xlu1 %285 }
 0x260   :  { %v288_v43 = vmul.f32 %v1420_v33, %v286_v42 }
 0x262   :  { %300 = vrot.lane.b32.xlu0 %v288_v43, %s1485_s4 }
 0x270   :  { %v1614_v47 = vpop.permute.xlu1 %291 }
 0x271   :  { %vm293_vm3 = vcmp.lt.s32.totalorder %v289_v46, %v1614_v47  ;;  %vm410_vm5 = vcmp.lt.s32.totalorder %v1643_v11, %v1614_v47  ;;  %v1693_v46 = vsel %vm188_vm2, 5, %v1489_v44 }
 0x272   :  { %vm528_vm6 = vcmp.lt.s32.totalorder %v1693_v46, %v1614_v47 }
 0x274   :  { %v296_v48 = vpop.permute.xlu1 %295 }
 0x275   :  { %v298_v49 = vsel %vm293_vm3, %v296_v48, 0.0 }
 0x276   :  { %389 = vrot.lane.b32.xlu1 %v298_v49, %s1485_s4 }
 0x2d4   :  { %v301_v50 = vpop.permute.xlu0 %300 }
 0x2d5   :  { %v1618_v51 = vsel %vm293_vm3, %v301_v50, 0.0  ;;  %v1702_v50 = vpop.f32.mrb[4].mxu0 }
 0x2d6   :  { %1267 = vmatmul.mubr.msk.f32.vlgmr.msra.gmra.mrb[2].mxu1 %vm190_vm4, %v1618_v51 }
 0x2d7   :  { %1365 = vmatpush3.bf16.msra.mxu1 %v1552_v12  ;;  %1277 = vmatprep.mubr.msk.f32.mxu1 %vm1482_vm0, %v1483_v4 }
 0x2d8   :  { %1366 = vmatprep.subr.bf16.mxu1 %v1481_v3 }
 0x2db   :  { %1368 = vmatpush3.bf16.msra.mxu1 %v1565_v17 }
 0x2dc   :  { %1375 = vmatprep.subr.bf16.mxu1 %v1481_v3 }
 0x2e8   :  { %v390_v63 = vpop.permute.xlu1 %389 }
 0x3a9   :  { %v376_v53 = vpop.f32.mrb[2].mxu1 }
 0x3aa   :  { %v380_v54 = vadd.f32 %v376_v53, %v140_v52  ;;  %v1268_v55 = vpop.f32.mrb[3].mxu1  ;;  %v154_v52 = vpop.f32.mrb[5].mxu0 }
 0x3ab   :  { %v1704_v53 = vpop.f32.mrb[6].mxu0 }
 0x3ac   :  { %1423 = vtanh.f32 %v380_v54  ;;  %v1150_v57 = vmul.f32 -1.442695, %v380_v54  ;;  %v1706_v54 = vpop.f32.mrb[7].mxu0 }
 0x3ae   :  { %1425 = vpow2.f32 %v1150_v57  ;;  %v150_v57 = vadd.f32 %v1652_v15, %v1595_v24  ;;  %v1490_v15 = vmov 3  }
 0x3af   :  { %v1729_v16 = vsel %vm188_vm2, 4, %v1490_v15 }
 0x3b0   :  { %vm646_vm7 = vcmp.lt.s32.totalorder %v1729_v16, %v1614_v47 }
 0x3b6   :  { %v1424_v56 = vpop.eup %1423 }
 0x3b7   :  { %394 = vrot.lane.b32.xlu0 %v1424_v56, %s1484_s21 }
 0x3b8   :  { %v1426_v58 = vpop.eup %1425 }
 0x3b9   :  { %v384_v59 = vadd.f32 1.0, %v1426_v58 }
 0x3bb   :  { %1427 = vrcp.f32 %v384_v59 }
 0x3c5   :  { %v1428_v60 = vpop.eup %1427 }
 0x3c6   :  { %v392_v0 = vmul.f32 %v1428_v60, %v390_v63 }
 0x429   :  { %v395_v61 = vpop.permute.xlu0 %394 }
 0x42a   :  { %v397_v62 = vmul.f32 %v1428_v60, %v395_v61 }
 0x42c   :  { %399 = vrot.lane.b32.xlu0 %v397_v62, %s1485_s4 }
 0x49e   :  { %v400_v1 = vpop.permute.xlu0 %399 }
 0x49f   :  { %v402_v2 = vadd.f32 %v400_v1, %v392_v0 }
 0x4a1   :  { %1429 = vtanh.f32 %v402_v2 }
 0x4ab   :  { %v1430_v7 = vpop.eup %1429 }
 0x4ac   :  { %405 = vrot.lane.b32.xlu1 %v1430_v7, %s1484_s21 }
 0x4b0   :  { %412 = vrot.lane.b32.xlu1 %v402_v2, %s1487_s24 }
 0x51e   :  { %v406_v8 = vpop.permute.xlu1 %405 }
 0x51f   :  { %v408_v9 = vmul.f32 %v1428_v60, %v406_v8 }
 0x521   :  { %417 = vrot.lane.b32.xlu0 %v408_v9, %s1485_s4 }
 0x522   :  { %v413_v13 = vpop.permute.xlu1 %412 }
 0x523   :  { %v415_v14 = vsel %vm410_vm5, %v413_v13, %v298_v49 }
 0x524   :  { %507 = vrot.lane.b32.xlu1 %v415_v14, %s1485_s4 }
 0x593   :  { %v1654_v18 = vpop.permute.xlu0 %417 }
 0x594   :  { %v420_v19 = vsel %vm410_vm5, %v1654_v18, %v1618_v51 }
 0x595   :  { %1278 = vmatmul.mubr.msk.f32.vlgmr.msra.gmra.mrb[4].mxu1 %vm190_vm4, %v420_v19 }
 0x596   :  { %1377 = vmatpush3.bf16.msra.mxu1 %v1552_v12  ;;  %1299 = vmatprep.mubr.msk.f32.mxu1 %vm1482_vm0, %v1483_v4  ;;  %v508_v32 = vpop.permute.xlu1 %507 }
 0x597   :  { %1378 = vmatprep.subr.bf16.mxu1 %v1481_v3 }
 0x59a   :  { %1380 = vmatpush3.bf16.msra.mxu1 %v1565_v17 }
 0x59b   :  { %1387 = vmatprep.subr.bf16.mxu1 %v1481_v3 }
 0x668   :  { %v494_v21 = vpop.f32.mrb[4].mxu1 }
 0x669   :  { %v498_v22 = vadd.f32 %v494_v21, %v145_v20  ;;  %v1279_v23 = vpop.f32.mrb[5].mxu1 }
 0x66a   :  { %v155_v23 = vadd.f32 %v1595_v24, %v154_v52 }
 0x66b   :  { %1431 = vtanh.f32 %v498_v22  ;;  %v1152_v26 = vmul.f32 -1.442695, %v498_v22 }
 0x66d   :  { %1433 = vpow2.f32 %v1152_v26 }
 0x675   :  { %v1432_v25 = vpop.eup %1431 }
 0x676   :  { %512 = vrot.lane.b32.xlu0 %v1432_v25, %s1484_s21 }
 0x677   :  { %v1434_v27 = vpop.eup %1433 }
 0x678   :  { %v502_v28 = vadd.f32 1.0, %v1434_v27 }
 0x67a   :  { %1435 = vrcp.f32 %v502_v28 }
 0x684   :  { %v1436_v29 = vpop.eup %1435 }
 0x685   :  { %v510_v33 = vmul.f32 %v1436_v29, %v508_v32 }
 0x6e8   :  { %v513_v30 = vpop.permute.xlu0 %512 }
 0x6e9   :  { %v515_v31 = vmul.f32 %v1436_v29, %v513_v30 }
 0x6eb   :  { %517 = vrot.lane.b32.xlu0 %v515_v31, %s1485_s4 }
 0x75d   :  { %v518_v34 = vpop.permute.xlu0 %517 }
 0x75e   :  { %v520_v35 = vadd.f32 %v518_v34, %v510_v33 }
 0x760   :  { %1437 = vtanh.f32 %v520_v35 }
 0x76a   :  { %v1438_v40 = vpop.eup %1437 }
 0x76b   :  { %523 = vrot.lane.b32.xlu1 %v1438_v40, %s1484_s21 }
 0x76f   :  { %530 = vrot.lane.b32.xlu1 %v520_v35, %s1487_s24 }
 0x7dd   :  { %v524_v42 = vpop.permute.xlu1 %523 }
 0x7de   :  { %v526_v43 = vmul.f32 %v1436_v29, %v524_v42 }
 0x7e0   :  { %535 = vrot.lane.b32.xlu0 %v526_v43, %s1485_s4  ;;  %v1491_v43 = vmov 4  }
 0x7e1   :  { %v531_v48 = vpop.permute.xlu1 %530  ;;  %v1757_v44 = vsel %vm188_vm2, 3, %v1491_v43 }
 0x7e2   :  { %v533_v49 = vsel %vm528_vm6, %v531_v48, %v415_v14  ;;  %vm764_vm8 = vcmp.lt.s32.totalorder %v1757_v44, %v1614_v47 }
 0x7e3   :  { %625 = vrot.lane.b32.xlu1 %v533_v49, %s1485_s4 }
 0x852   :  { %v1708_v55 = vpop.permute.xlu0 %535 }
 0x853   :  { %v538_v56 = vsel %vm528_vm6, %v1708_v55, %v420_v19 }
 0x854   :  { %1289 = vmatmul.mubr.msk.f32.vlgmr.msra.gmra.mrb[8].mxu0 %vm190_vm4, %v538_v56 }
 0x855   :  { %1383 = vmatpush3.bf16.msra.mxu0 %v1552_v12  ;;  %1310 = vmatprep.mubr.msk.f32.mxu0 %vm1482_vm0, %v1483_v4  ;;  %v626_v6 = vpop.permute.xlu1 %625 }
 0x856   :  { %1384 = vmatprep.subr.bf16.mxu0 %v1481_v3 }
 0x859   :  { %1386 = vmatpush3.bf16.msra.mxu0 %v1565_v17 }
 0x85a   :  { %1393 = vmatprep.subr.bf16.mxu0 %v1481_v3 }
 0x927   :  { %v612_v58 = vpop.f32.mrb[8].mxu0 }
 0x928   :  { %v616_v59 = vadd.f32 %v612_v58, %v150_v57  ;;  %v1290_v60 = vpop.f32.mrb[9].mxu0  ;;  %v160_v57 = vadd.f32 %v1702_v50, %v1595_v24 }
 0x92a   :  { %1439 = vtanh.f32 %v616_v59  ;;  %v1154_v62 = vmul.f32 -1.442695, %v616_v59 }
 0x92c   :  { %1441 = vpow2.f32 %v1154_v62 }
 0x934   :  { %v1440_v61 = vpop.eup %1439 }
 0x935   :  { %630 = vrot.lane.b32.xlu0 %v1440_v61, %s1484_s21 }
 0x936   :  { %v1442_v63 = vpop.eup %1441 }
 0x937   :  { %v620_v0 = vadd.f32 1.0, %v1442_v63 }
 0x939   :  { %1443 = vrcp.f32 %v620_v0 }
 0x943   :  { %v1444_v1 = vpop.eup %1443 }
 0x944   :  { %v628_v7 = vmul.f32 %v1444_v1, %v626_v6 }
 0x9a7   :  { %v631_v2 = vpop.permute.xlu0 %630 }
 0x9a8   :  { %v633_v5 = vmul.f32 %v1444_v1, %v631_v2 }
 0x9aa   :  { %635 = vrot.lane.b32.xlu0 %v633_v5, %s1485_s4 }
 0xa1c   :  { %v636_v8 = vpop.permute.xlu0 %635 }
 0xa1d   :  { %v638_v9 = vadd.f32 %v636_v8, %v628_v7  ;;  %v1492_v8 = vmov 5  }
 0xa1f   :  { %1445 = vtanh.f32 %v638_v9 }
 0xa29   :  { %v1446_v10 = vpop.eup %1445 }
 0xa2a   :  { %641 = vrot.lane.b32.xlu1 %v1446_v10, %s1484_s21 }
 0xa2e   :  { %648 = vrot.lane.b32.xlu1 %v638_v9, %s1487_s24  ;;  %v1786_v9 = vsel %vm188_vm2, 2, %v1492_v8 }
 0xa2f   :  { %vm882_vm9 = vcmp.lt.s32.totalorder %v1786_v9, %v1614_v47 }
 0xa9c   :  { %v642_v13 = vpop.permute.xlu1 %641 }
 0xa9d   :  { %v644_v14 = vmul.f32 %v1444_v1, %v642_v13 }
 0xa9f   :  { %653 = vrot.lane.b32.xlu0 %v644_v14, %s1485_s4 }
 0xaa0   :  { %v649_v19 = vpop.permute.xlu1 %648 }
 0xaa1   :  { %v651_v20 = vsel %vm646_vm7, %v649_v19, %v533_v49  ;;  %v165_v19 = vadd.f32 %v1595_v24, %v1706_v54 }
 0xaa2   :  { %743 = vrot.lane.b32.xlu1 %v651_v20, %s1485_s4 }
 0xb11   :  { %v1738_v21 = vpop.permute.xlu0 %653 }
 0xb12   :  { %v656_v22 = vsel %vm646_vm7, %v1738_v21, %v538_v56 }
 0xb13   :  { %1300 = vmatmul.mubr.msk.f32.vlgmr.msra.gmra.mrb[6].mxu1 %vm190_vm4, %v656_v22 }
 0xb14   :  { %1389 = vmatpush3.bf16.msra.mxu1 %v1552_v12  ;;  %1321 = vmatprep.mubr.msk.f32.mxu1 %vm1482_vm0, %v1483_v4  ;;  %v744_v35 = vpop.permute.xlu1 %743 }
 0xb15   :  { %1390 = vmatprep.subr.bf16.mxu1 %v1481_v3 }
 0xb18   :  { %1392 = vmatpush3.bf16.msra.mxu1 %v1565_v17 }
 0xbe6   :  { %v730_v25 = vpop.f32.mrb[6].mxu1 }
 0xbe7   :  { %v734_v26 = vadd.f32 %v730_v25, %v155_v23  ;;  %v1301_v27 = vpop.f32.mrb[7].mxu1 }
 0xbe9   :  { %1447 = vtanh.f32 %v734_v26  ;;  %v1156_v29 = vmul.f32 -1.442695, %v734_v26 }
 0xbeb   :  { %1449 = vpow2.f32 %v1156_v29 }
 0xbf3   :  { %v1448_v28 = vpop.eup %1447 }
 0xbf4   :  { %748 = vrot.lane.b32.xlu0 %v1448_v28, %s1484_s21 }
 0xbf5   :  { %v1450_v30 = vpop.eup %1449 }
 0xbf6   :  { %v738_v31 = vadd.f32 1.0, %v1450_v30 }
 0xbf8   :  { %1451 = vrcp.f32 %v738_v31 }
 0xc02   :  { %v1452_v32 = vpop.eup %1451 }
 0xc03   :  { %v746_v36 = vmul.f32 %v1452_v32, %v744_v35 }
 0xc66   :  { %v749_v33 = vpop.permute.xlu0 %748 }
 0xc67   :  { %v751_v34 = vmul.f32 %v1452_v32, %v749_v33 }
 0xc69   :  { %753 = vrot.lane.b32.xlu0 %v751_v34, %s1485_s4 }
 0xcdb   :  { %v754_v37 = vpop.permute.xlu0 %753 }
 0xcdc   :  { %v756_v38 = vadd.f32 %v754_v37, %v746_v36 }
 0xcde   :  { %1453 = vtanh.f32 %v756_v38 }
 0xce8   :  { %v1454_v39 = vpop.eup %1453 }
 0xce9   :  { %759 = vrot.lane.b32.xlu1 %v1454_v39, %s1484_s21 }
 0xced   :  { %766 = vrot.lane.b32.xlu1 %v756_v38, %s1487_s24  ;;  %v1493_v38 = vmov 6  }
 0xcee   :  { %v999_v39 = vsel %vm188_vm2, 1, %v1493_v38 }
 0xcef   :  { %vm1000_vm10 = vcmp.lt.s32.totalorder %v999_v39, %v1614_v47 }
 0xd5b   :  { %v760_v40 = vpop.permute.xlu1 %759 }
 0xd5c   :  { %v762_v42 = vmul.f32 %v1452_v32, %v760_v40 }
 0xd5e   :  { %771 = vrot.lane.b32.xlu0 %v762_v42, %s1485_s4 }
 0xd5f   :  { %v767_v48 = vpop.permute.xlu1 %766 }
 0xd60   :  { %v769_v49 = vsel %vm764_vm8, %v767_v48, %v651_v20 }
 0xd61   :  { %861 = vrot.lane.b32.xlu1 %v769_v49, %s1485_s4 }
 0xdd0   :  { %v1766_v52 = vpop.permute.xlu0 %771 }
 0xdd1   :  { %v774_v56 = vsel %vm764_vm8, %v1766_v52, %v656_v22 }
 0xdd2   :  { %1311 = vmatmul.mubr.msk.f32.vlgmr.msra.gmra.mrb[10].mxu0 %vm190_vm4, %v774_v56 }
 0xdd3   :  { %1395 = vmatpush3.bf16.msra.mxu0 %v1552_v12  ;;  %1332 = vmatprep.mubr.msk.f32.mxu0 %vm1482_vm0, %v1483_v4 }
 0xdd4   :  { %1396 = vmatprep.subr.bf16.mxu0 %v1481_v3 }
 0xdd7   :  { %1398 = vmatpush3.bf16.msra.mxu0 %v1565_v17  ;;  %v862_v17 = vpop.permute.xlu1 %861 }
 0xea5   :  { %v848_v58 = vpop.f32.mrb[10].mxu0 }
 0xea6   :  { %v852_v59 = vadd.f32 %v848_v58, %v160_v57  ;;  %v1312_v60 = vpop.f32.mrb[11].mxu0 }
 0xea8   :  { %1455 = vtanh.f32 %v852_v59  ;;  %v1158_v62 = vmul.f32 -1.442695, %v852_v59 }
 0xeaa   :  { %1457 = vpow2.f32 %v1158_v62  ;;  %v1125_v62 = vcvt.s32.f32 %v1604_v41 }
 0xeb2   :  { %v1456_v61 = vpop.eup %1455 }
 0xeb3   :  { %866 = vrot.lane.b32.xlu0 %v1456_v61, %s1484_s21 }
 0xeb4   :  { %v1458_v12 = vpop.eup %1457 }
 0xeb5   :  { %v856_v63 = vadd.f32 1.0, %v1458_v12 }
 0xeb7   :  { %1459 = vrcp.f32 %v856_v63  ;;  %v1126_v63 = vmax.f32 %v1125_v62, 1.0 }
 0xec1   :  { %v1460_v4 = vpop.eup %1459 }
 0xec2   :  { %v864_v1 = vmul.f32 %v1460_v4, %v862_v17 }
 0xf25   :  { %v867_v0 = vpop.permute.xlu0 %866 }
 0xf26   :  { %v869_v3 = vmul.f32 %v1460_v4, %v867_v0 }
 0xf28   :  { %871 = vrot.lane.b32.xlu0 %v869_v3, %s1485_s4 }
 0xf9a   :  { %v872_v50 = vpop.permute.xlu0 %871 }
 0xf9b   :  { %v874_v2 = vadd.f32 %v872_v50, %v864_v1 }
 0xf9d   :  { %1461 = vtanh.f32 %v874_v2 }
 0xfa7   :  { %v1462_v5 = vpop.eup %1461 }
 0xfa8   :  { %877 = vrot.lane.b32.xlu1 %v1462_v5, %s1484_s21 }
 0xfac   :  { %884 = vrot.lane.b32.xlu1 %v874_v2, %s1487_s24 }
0x101a   :  { %v878_v6 = vpop.permute.xlu1 %877 }
0x101b   :  { %v880_v7 = vmul.f32 %v1460_v4, %v878_v6  ;;  %v421_v6 = vsel %vm410_vm5, %v1654_v18, 0.0 }
0x101c   :  { %v422_v8 = vadd.f32 %v421_v6, %v1618_v51 }
0x101d   :  { %889 = vrot.lane.b32.xlu0 %v880_v7, %s1485_s4  ;;  %v539_v7 = vsel %vm528_vm6, %v1708_v55, 0.0  ;;  %v1494_v55 = vmov 7  }
0x101e   :  { %v885_v10 = vpop.permute.xlu1 %884  ;;  %v1117_v16 = vsel %vm188_vm2, 0, %v1494_v55 }
0x101f   :  { %v887_v13 = vsel %vm882_vm9, %v885_v10, %v769_v49  ;;  %v170_v49 = vadd.f32 %v1704_v53, %v1595_v24  ;;  %v657_v10 = vsel %vm646_vm7, %v1738_v21, 0.0  ;;  %vm1118_vm11 = vcmp.lt.s32.totalorder %v1117_v16, %v1614_v47 }
0x1020   :  { %979 = vrot.lane.b32.xlu1 %v887_v13, %s1485_s4 }
0x108f   :  { %v1795_v14 = vpop.permute.xlu0 %889 }
0x1090   :  { %v892_v15 = vsel %vm882_vm9, %v1795_v14, %v774_v56  ;;  %v893_v18 = vsel %vm882_vm9, %v1795_v14, 0.0 }
0x1091   :  { %1322 = vmatmul.mubr.msk.f32.vlgmr.msra.gmra.mrb[8].mxu1 %vm190_vm4, %v892_v15 }
0x1092   :  { %v980_v32 = vpop.permute.xlu1 %979 }
0x1164   :  { %v966_v20 = vpop.f32.mrb[8].mxu1 }
0x1165   :  { %v970_v22 = vadd.f32 %v966_v20, %v165_v19  ;;  %v1323_v23 = vpop.f32.mrb[9].mxu1 }
0x1167   :  { %1463 = vtanh.f32 %v970_v22  ;;  %v1160_v26 = vmul.f32 -1.442695, %v970_v22 }
0x1169   :  { %1465 = vpow2.f32 %v1160_v26 }
0x1171   :  { %v1464_v25 = vpop.eup %1463 }
0x1172   :  { %984 = vrot.lane.b32.xlu0 %v1464_v25, %s1484_s21 }
0x1173   :  { %v1466_v27 = vpop.eup %1465 }
0x1174   :  { %v974_v28 = vadd.f32 1.0, %v1466_v27 }
0x1176   :  { %1467 = vrcp.f32 %v974_v28 }
0x1180   :  { %v1468_v29 = vpop.eup %1467 }
0x1181   :  { %v982_v33 = vmul.f32 %v1468_v29, %v980_v32 }
0x11e4   :  { %v985_v30 = vpop.permute.xlu0 %984 }
0x11e5   :  { %v987_v31 = vmul.f32 %v1468_v29, %v985_v30 }
0x11e7   :  { %989 = vrot.lane.b32.xlu0 %v987_v31, %s1485_s4 }
0x1259   :  { %v990_v54 = vpop.permute.xlu0 %989 }
0x125a   :  { %v992_v34 = vadd.f32 %v990_v54, %v982_v33 }
0x125c   :  { %1469 = vtanh.f32 %v992_v34 }
0x1266   :  { %v1470_v35 = vpop.eup %1469 }
0x1267   :  { %995 = vrot.lane.b32.xlu1 %v1470_v35, %s1484_s21 }
0x126b   :  { %1002 = vrot.lane.b32.xlu1 %v992_v34, %s1487_s24 }
0x12d9   :  { %v996_v36 = vpop.permute.xlu1 %995 }
0x12da   :  { %v998_v37 = vmul.f32 %v1468_v29, %v996_v36 }
0x12dc   :  { %1007 = vrot.lane.b32.xlu0 %v998_v37, %s1485_s4 }
0x12dd   :  { %v1003_v40 = vpop.permute.xlu1 %1002 }
0x12de   :  { %v1005_v42 = vsel %vm1000_vm10, %v1003_v40, %v887_v13  ;;  %v540_v13 = vadd.f32 %v539_v7, %v422_v8 }
0x12df   :  { %1097 = vrot.lane.b32.xlu1 %v1005_v42, %s1485_s4 }
0x12e0   :  { %v658_v11 = vadd.f32 %v657_v10, %v540_v13 }
0x134e   :  { %v1008_v43 = vpop.permute.xlu0 %1007 }
0x134f   :  { %v1010_v48 = vsel %vm1000_vm10, %v1008_v43, %v892_v15  ;;  %v775_v15 = vsel %vm764_vm8, %v1766_v52, 0.0  ;;  %v1011_v51 = vsel %vm1000_vm10, %v1008_v43, 0.0 }
0x1350   :  { %1333 = vmatmul.mubr.msk.f32.vlgmr.msra.gmra.mrb[12].mxu0 %vm190_vm4, %v1010_v48  ;;  %v776_v46 = vadd.f32 %v775_v15, %v658_v11 }
0x1351   :  { %v1098_v53 = vpop.permute.xlu1 %1097 }
0x1352   :  { %v894_v21 = vadd.f32 %v893_v18, %v776_v46 }
0x1354   :  { %v1012_v19 = vadd.f32 %v1011_v51, %v894_v21 }
0x1423   :  { %v1084_v56 = vpop.f32.mrb[12].mxu0 }
0x1424   :  { %v1088_v57 = vadd.f32 %v1084_v56, %v170_v49  ;;  %v1334_v58 = vpop.f32.mrb[13].mxu0 }
0x1426   :  { %1471 = vtanh.f32 %v1088_v57  ;;  %v1162_v60 = vmul.f32 -1.442695, %v1088_v57 }
0x1428   :  { %1473 = vpow2.f32 %v1162_v60 }
0x1430   :  { %v1472_v59 = vpop.eup %1471 }
0x1431   :  { %1102 = vrot.lane.b32.xlu0 %v1472_v59, %s1484_s21 }
0x1432   :  { %v1474_v61 = vpop.eup %1473 }
0x1433   :  { %v1092_v12 = vadd.f32 1.0, %v1474_v61 }
0x1435   :  { %1475 = vrcp.f32 %v1092_v12 }
0x1436   :  { %1477 = vrcp.f32 %v1126_v63 }
0x143f   :  { %v1476_v4 = vpop.eup %1475 }
0x1440   :  { %v1478_v24 = vpop.eup %1477  ;;  %v1100_v17 = vmul.f32 %v1476_v4, %v1098_v53 }
0x14a3   :  { %v1103_v0 = vpop.permute.xlu0 %1102 }
0x14a4   :  { %v1105_v3 = vmul.f32 %v1476_v4, %v1103_v0 }
0x14a6   :  { %1107 = vrot.lane.b32.xlu0 %v1105_v3, %s1485_s4 }
0x14aa   :  { %1130 = vperm.xlu0 %1414, %v1478_v24  }
0x1518   :  { %v1108_v1 = vpop.permute.xlu0 %1107 }
0x1519   :  { %v1110_v50 = vadd.f32 %v1108_v1, %v1100_v17 }
0x151b   :  { %1479 = vtanh.f32 %v1110_v50 }
0x1525   :  { %v1480_v2 = vpop.eup %1479 }
0x1526   :  { %1113 = vrot.lane.b32.xlu1 %v1480_v2, %s1484_s21 }
0x1529   :  { %v1131_v20 = vpop.permute.xlu0 %1130 }
0x1598   :  { %v1114_v41 = vpop.permute.xlu1 %1113 }
0x1599   :  { %v1116_v5 = vmul.f32 %v1476_v4, %v1114_v41 }
0x159b   :  { %1120 = vrot.lane.b32.xlu1 %v1116_v5, %s1485_s4 }
0x160d   :  { %v1121_v44 = vpop.permute.xlu1 %1120 }
0x160e   :  { %v1123_v52 = vsel %vm1118_vm11, %v1121_v44, 0.0 }
0x160f   :  { %v1124_v22 = vadd.f32 %v1123_v52, %v1012_v19 }
0x1611   :  { %v1133_v23 = vmul.f32 %v1131_v20, %v1124_v22 }
0x1613   :  { %1134 = vst.msk [vmem:[%s1860_s5] sm:$0xff] %vm190_vm4, %v1133_v23 }

</bundles_post_ra>
